<compile_context>
chip_gen: v7x
topology: tpu7x:2x2x1
jax: 0.10.0
libtpu: 0.0.40
codegen_flags: <defaults>
</compile_context>

<pallas_src>
import functools

import jax
import jax.numpy as jnp
from jax.experimental import pallas as pl
from jax.experimental.pallas import tpu as pltpu

LANE = 128


def _round_up(x, m):
    return (x + m - 1) // m * m


def rnn_seq_kernel(x_ref, h0_ref, wc_ref, bh_ref, who_ref, bo_ref,
                   out_ref, hfin_ref, comb_ref, *, hp):
    t = pl.program_id(0)

    # Step 0: load the initial hidden state into the h-half of the combined buffer.
    @pl.when(t == 0)
    def _():
        comb_ref[:, :hp] = h0_ref[...]

    # Stream this timestep's (lane-padded) input into the x-half (128-lane aligned store).
    comb_ref[:, hp:] = x_ref[0]

    # i2h: one MXU pass over the concatenated [h | x] buffer (padded rows of wc are zero).
    hidden = (jnp.dot(comb_ref[...], wc_ref[...],
                      preferred_element_type=jnp.float32)
              + bh_ref[...])
    comb_ref[:, :hp] = hidden        # carry to next step, stays in VMEM
    hfin_ref[...] = hidden           # constant-index output: written back to HBM once at the end

    # h2o + LogSoftmax (padded logit lanes carry a -1e30 bias, so exp() underflows to 0).
    logits = (jnp.dot(hidden, who_ref[...],
                      preferred_element_type=jnp.float32)
              + bo_ref[...])
    m = jnp.max(logits, axis=-1, keepdims=True)
    lse = jnp.log(jnp.sum(jnp.exp(logits - m), axis=-1, keepdims=True)) + m
    out_ref[0] = (logits - lse).astype(out_ref.dtype)


def prepare_params(w_i2h, b_i2h, w_h2o, b_h2o):
    """One-time repack of torch-layout params into a padded, MXU-friendly layout.

    w_i2h: [H, I+H] (torch nn.Linear(I+H, H).weight), w_h2o: [O, H].
    """
    H, IH = w_i2h.shape
    I = IH - H
    O = w_h2o.shape[0]
    HP, IP, OP = _round_up(H, LANE), _round_up(I, LANE), _round_up(O, LANE)
    KP = HP + IP

    wxh = w_i2h[:, :I].T       # [I, H]
    whh = w_i2h[:, I:].T       # [H, H]

    # Combined-buffer layout: lanes [0, HP) hold h, lanes [HP, HP+IP) hold x.
    w_c = jnp.zeros((KP, HP), jnp.float32)
    w_c = w_c.at[:H, :H].set(whh)
    w_c = w_c.at[HP:HP + I, :H].set(wxh)
    b_h = jnp.zeros((1, HP), jnp.float32).at[0, :H].set(b_i2h)

    w_o = jnp.zeros((HP, OP), jnp.float32).at[:H, :O].set(w_h2o.T)
    # Padded output lanes get a huge negative bias so LogSoftmax ignores them.
    b_o = jnp.full((1, OP), -1e30, jnp.float32).at[0, :O].set(b_h2o)

    return dict(w_c=w_c, b_h=b_h, w_o=w_o, b_o=b_o,
                sizes=(I, H, O, IP, HP, OP))
    # TODO(synk): for v6e/v7x at larger H/O, store w_c/w_o in bfloat16 (keep f32 accumulation).


def rnn_sequence(x_seq, h0, params):
    """Run the RNN cell over a whole sequence in one fused Pallas call.

    x_seq: [T, B, I], h0: [B, H] -> (log-probs [T, B, O], final hidden [B, H]).
    Each grid step t is exactly the torch RNN.forward(input_t, hidden) update.
    """
    I, H, O, IP, HP, OP = params["sizes"]
    T, B, _ = x_seq.shape
    KP = HP + IP

    # Lane-pad inputs once (outside the timestep loop).
    x_pad = jnp.zeros((T, B, IP), jnp.float32).at[:, :, :I].set(x_seq)
    h0_pad = jnp.zeros((B, HP), jnp.float32).at[:, :H].set(h0)

    const = lambda shape: pl.BlockSpec(shape, lambda t: (0,) * len(shape))
    kernel = functools.partial(rnn_seq_kernel, hp=HP)

    out_pad, h_pad = pl.pallas_call(
        kernel,
        out_shape=(jax.ShapeDtypeStruct((T, B, OP), jnp.float32),
                   jax.ShapeDtypeStruct((B, HP), jnp.float32)),
        grid_spec=pltpu.PrefetchScalarGridSpec(
            num_scalar_prefetch=0,
            grid=(T,),
            in_specs=[
                pl.BlockSpec((1, B, IP), lambda t: (t, 0, 0)),   # x[t]: streamed / pipelined
                const((B, HP)),                                  # h0: fetched once
                const((KP, HP)),                                 # combined i2h weight: resident
                const((1, HP)),                                  # i2h bias: resident
                const((HP, OP)),                                 # h2o weight: resident
                const((1, OP)),                                  # h2o bias: resident
            ],
            out_specs=(
                pl.BlockSpec((1, B, OP), lambda t: (t, 0, 0)),   # per-step log-probs
                const((B, HP)),                                  # final hidden: written once
            ),
            scratch_shapes=[pltpu.VMEM((B, KP), jnp.float32)],   # persistent [h | x] buffer
        ),
        compiler_params=pltpu.CompilerParams(
            dimension_semantics=("arbitrary",)),                 # sequential carry over T
    )(x_pad, h0_pad, params["w_c"], params["b_h"], params["w_o"], params["b_o"])

    return out_pad[:, :, :O], h_pad[:, :H]


def rnn_forward(x, h, params):
    """Single-step forward matching torch RNN.forward(input, hidden) -> (output, hidden)."""
    out_seq, h_new = rnn_sequence(x[None], h, params)
    return out_seq[0], h_new


if __name__ == "__main__":
    input_size, hidden_size, output_size = 16, 32, 8
    batch, seq_len = 2, 8

    key = jax.random.PRNGKey(0)
    k1, k2, k3, k4, k5 = jax.random.split(key, 5)

    # Deterministic parameter init (uniform like torch.nn.Linear default scale)
    bound_i2h = 1.0 / jnp.sqrt(input_size + hidden_size)
    bound_h2o = 1.0 / jnp.sqrt(hidden_size)
    w_i2h = jax.random.uniform(k1, (hidden_size, input_size + hidden_size),
                               jnp.float32, -bound_i2h, bound_i2h)
    b_i2h = jax.random.uniform(k2, (hidden_size,), jnp.float32, -bound_i2h, bound_i2h)
    w_h2o = jax.random.uniform(k3, (output_size, hidden_size),
                               jnp.float32, -bound_h2o, bound_h2o)
    b_h2o = jax.random.uniform(k4, (output_size,), jnp.float32, -bound_h2o, bound_h2o)

    x_seq = jax.random.normal(k5, (seq_len, batch, input_size), jnp.float32)
    h0 = jnp.zeros((batch, hidden_size), jnp.float32)   # initHidden()

    params = prepare_params(w_i2h, b_i2h, w_h2o, b_h2o)          # one-time repack
    seq_fn = jax.jit(lambda xs, h: rnn_sequence(xs, h, params))  # params baked in as constants

    out_seq, h_final = seq_fn(x_seq, h0)
    jax.block_until_ready((out_seq, h_final))

    # Pure-JAX per-step reference (exactly the torch forward).
    h = h0
    outs = []
    for t in range(seq_len):
        combined = jnp.concatenate([x_seq[t], h], axis=1)
        h = combined @ w_i2h.T + b_i2h
        o = h @ w_h2o.T + b_h2o
        o = o - jax.scipy.special.logsumexp(o, axis=1, keepdims=True)
        outs.append(o)
    out_ref = jnp.stack(outs)

    assert out_seq.shape == (seq_len, batch, output_size)
    assert h_final.shape == (batch, hidden_size)
    assert jnp.allclose(h_final, h, atol=1e-4), "final hidden mismatch"
    assert jnp.allclose(out_seq, out_ref, atol=1e-4), "output mismatch"

    # Single-step API (same (output, hidden) semantics as RNN.forward).
    out1, h1 = rnn_forward(x_seq[0], h0, params)
    jax.block_until_ready((out1, h1))
    h1_ref = jnp.concatenate([x_seq[0], h0], axis=1) @ w_i2h.T + b_i2h
    assert jnp.allclose(out1, out_ref[0], atol=1e-4), "single-step output mismatch"
    assert jnp.allclose(h1, h1_ref, atol=1e-4), "single-step hidden mismatch"

    print("KERNEL_OK")
</pallas_src>

<mosaic_0001>
module attributes {stable_mosaic.version = 11 : i64} {
  func.func @rnn_seq_kernel(%arg0: i32, %arg1: memref<1x2x128xf32, #tpu.memory_space<vmem>>, %arg2: memref<2x128xf32, #tpu.memory_space<vmem>>, %arg3: memref<256x128xf32, #tpu.memory_space<vmem>>, %arg4: memref<1x128xf32, #tpu.memory_space<vmem>>, %arg5: memref<128x128xf32, #tpu.memory_space<vmem>>, %arg6: memref<1x128xf32, #tpu.memory_space<vmem>>, %arg7: memref<1x2x128xf32, #tpu.memory_space<vmem>>, %arg8: memref<2x128xf32, #tpu.memory_space<vmem>>, %arg9: memref<2x256xf32, #tpu.memory_space<vmem>>) attributes {dimension_semantics = [#tpu.dimension_semantics<arbitrary>], iteration_bounds = array<i64: 8>, scalar_prefetch = 0 : i64, scratch_operands = 1 : i64, tpu.core_type = #tpu.core_type<tc>, window_params = [{transform_indices = @transform_0, window_bounds = array<i64: 1, 2, 128>}, {pipeline_mode = #tpu.pipeline_mode<synchronous>, transform_indices = @transform_1, window_bounds = array<i64: 2, 128>}, {pipeline_mode = #tpu.pipeline_mode<synchronous>, transform_indices = @transform_2, window_bounds = array<i64: 256, 128>}, {pipeline_mode = #tpu.pipeline_mode<synchronous>, transform_indices = @transform_3, window_bounds = array<i64: 1, 128>}, {pipeline_mode = #tpu.pipeline_mode<synchronous>, transform_indices = @transform_4, window_bounds = array<i64: 128, 128>}, {pipeline_mode = #tpu.pipeline_mode<synchronous>, transform_indices = @transform_5, window_bounds = array<i64: 1, 128>}, {transform_indices = @transform_6, window_bounds = array<i64: 1, 2, 128>}, {pipeline_mode = #tpu.pipeline_mode<synchronous>, transform_indices = @transform_7, window_bounds = array<i64: 2, 128>}]} {
    %c0_i32 = arith.constant 0 : i32
    %0 = arith.cmpi eq, %arg0, %c0_i32 : i32
    %1 = arith.extui %0 : i1 to i32
    %c0_i32_0 = arith.constant 0 : i32
    %2 = arith.cmpi ne, %1, %c0_i32_0 : i32
    scf.if %2 {
      %c0_24 = arith.constant 0 : index
      %c0_25 = arith.constant 0 : index
      %33 = vector.load %arg2[%c0_24, %c0_25] : memref<2x128xf32, #tpu.memory_space<vmem>>, vector<2x128xf32>
      %c0_26 = arith.constant 0 : index
      %c0_27 = arith.constant 0 : index
      %34 = vector.load %arg9[%c0_26, %c0_27] : memref<2x256xf32, #tpu.memory_space<vmem>>, vector<2x128xf32>
      tpu.vector_store %arg9[%c0_26, %c0_27], %33 {strides = array<i32>} : memref<2x256xf32, #tpu.memory_space<vmem>>, vector<2x128xf32>,
    } else {
    }
    %c0 = arith.constant 0 : index
    %c0_1 = arith.constant 0 : index
    %c0_2 = arith.constant 0 : index
    %3 = vector.load %arg1[%c0, %c0_1, %c0_2] : memref<1x2x128xf32, #tpu.memory_space<vmem>>, vector<1x2x128xf32>
    %4 = vector.shape_cast %3 : vector<1x2x128xf32> to vector<2x128xf32>
    %c0_3 = arith.constant 0 : index
    %c128 = arith.constant 128 : index
    %5 = vector.load %arg9[%c0_3, %c128] : memref<2x256xf32, #tpu.memory_space<vmem>>, vector<2x128xf32>
    tpu.vector_store %arg9[%c0_3, %c128], %4 {strides = array<i32>} : memref<2x256xf32, #tpu.memory_space<vmem>>, vector<2x128xf32>,
    %c0_4 = arith.constant 0 : index
    %c0_5 = arith.constant 0 : index
    %6 = vector.load %arg9[%c0_4, %c0_5] : memref<2x256xf32, #tpu.memory_space<vmem>>, vector<2x256xf32>
    %c0_6 = arith.constant 0 : index
    %c0_7 = arith.constant 0 : index
    %7 = vector.load %arg3[%c0_6, %c0_7] : memref<256x128xf32, #tpu.memory_space<vmem>>, vector<256x128xf32>
    %cst = arith.constant dense<0.000000e+00> : vector<2x128xf32>
    %8 = tpu.matmul %6, %7, %cst {dimension_numbers = #tpu.dot_dimension_numbers<[1], [0], [0], [1], [0, 0, 1, 1], [], []>} : vector<2x256xf32>, vector<256x128xf32>, vector<2x128xf32> -> vector<2x128xf32>
    %c0_8 = arith.constant 0 : index
    %c0_9 = arith.constant 0 : index
    %9 = vector.load %arg4[%c0_8, %c0_9] : memref<1x128xf32, #tpu.memory_space<vmem>>, vector<1x128xf32>
    %10 = vector.broadcast %9 : vector<1x128xf32> to vector<2x128xf32>
    %11 = arith.addf %8, %10 : vector<2x128xf32>
    %c0_10 = arith.constant 0 : index
    %c0_11 = arith.constant 0 : index
    %12 = vector.load %arg9[%c0_10, %c0_11] : memref<2x256xf32, #tpu.memory_space<vmem>>, vector<2x128xf32>
    tpu.vector_store %arg9[%c0_10, %c0_11], %11 {strides = array<i32>} : memref<2x256xf32, #tpu.memory_space<vmem>>, vector<2x128xf32>,
    %c0_12 = arith.constant 0 : index
    %c0_13 = arith.constant 0 : index
    %13 = vector.load %arg8[%c0_12, %c0_13] : memref<2x128xf32, #tpu.memory_space<vmem>>, vector<2x128xf32>
    tpu.vector_store %arg8[%c0_12, %c0_13], %11 {strides = array<i32>} : memref<2x128xf32, #tpu.memory_space<vmem>>, vector<2x128xf32>,
    %c0_14 = arith.constant 0 : index
    %c0_15 = arith.constant 0 : index
    %14 = vector.load %arg5[%c0_14, %c0_15] : memref<128x128xf32, #tpu.memory_space<vmem>>, vector<128x128xf32>
    %cst_16 = arith.constant dense<0.000000e+00> : vector<2x128xf32>
    %15 = tpu.matmul %11, %14, %cst_16 {dimension_numbers = #tpu.dot_dimension_numbers<[1], [0], [0], [1], [0, 0, 1, 1], [], []>} : vector<2x128xf32>, vector<128x128xf32>, vector<2x128xf32> -> vector<2x128xf32>
    %c0_17 = arith.constant 0 : index
    %c0_18 = arith.constant 0 : index
    %16 = vector.load %arg6[%c0_17, %c0_18] : memref<1x128xf32, #tpu.memory_space<vmem>>, vector<1x128xf32>
    %17 = vector.broadcast %16 : vector<1x128xf32> to vector<2x128xf32>
    %18 = arith.addf %15, %17 : vector<2x128xf32>
    %cst_19 = arith.constant dense<0xFF800000> : vector<2xf32>
    %19 = vector.multi_reduction <maximumf>, %18, %cst_19 [1] : vector<2x128xf32> to vector<2xf32>
    %20 = vector.shape_cast %19 : vector<2xf32> to vector<2x1xf32>
    %21 = vector.broadcast %20 : vector<2x1xf32> to vector<2x128xf32>
    %22 = arith.subf %18, %21 : vector<2x128xf32>
    %23 = math.exp %22 : vector<2x128xf32>
    %cst_20 = arith.constant dense<0.000000e+00> : vector<2xf32>
    %24 = vector.multi_reduction <add>, %23, %cst_20 [1] : vector<2x128xf32> to vector<2xf32>
    %25 = vector.shape_cast %24 : vector<2xf32> to vector<2x1xf32>
    %26 = math.log %25 : vector<2x1xf32>
    %27 = arith.addf %26, %20 : vector<2x1xf32>
    %28 = vector.broadcast %27 : vector<2x1xf32> to vector<2x128xf32>
    %29 = arith.subf %18, %28 : vector<2x128xf32>
    %c0_21 = arith.constant 0 : index
    %c0_22 = arith.constant 0 : index
    %c0_23 = arith.constant 0 : index
    %30 = vector.load %arg7[%c0_21, %c0_22, %c0_23] : memref<1x2x128xf32, #tpu.memory_space<vmem>>, vector<1x2x128xf32>
    %31 = vector.shape_cast %30 : vector<1x2x128xf32> to vector<2x128xf32>
    %32 = vector.shape_cast %29 : vector<2x128xf32> to vector<1x2x128xf32>
    tpu.vector_store %arg7[%c0_21, %c0_22, %c0_23], %32 {strides = array<i32>} : memref<1x2x128xf32, #tpu.memory_space<vmem>>, vector<1x2x128xf32>,
    return
  }
  func.func @transform_0(%arg0: i32) -> (i32, i32, i32) {
    %c0_i32 = arith.constant 0 : i32
    %c0_i32_0 = arith.constant 0 : i32
    %c0_i32_1 = arith.constant 0 : i32
    return %arg0, %c0_i32, %c0_i32_0 : i32, i32, i32
  }
  func.func @transform_1(%arg0: i32) -> (i32, i32) {
    %c0_i32 = arith.constant 0 : i32
    %c0_i32_0 = arith.constant 0 : i32
    %c0_i32_1 = arith.constant 0 : i32
    return %c0_i32, %c0_i32_0 : i32, i32
  }
  func.func @transform_2(%arg0: i32) -> (i32, i32) {
    %c0_i32 = arith.constant 0 : i32
    %c0_i32_0 = arith.constant 0 : i32
    %c0_i32_1 = arith.constant 0 : i32
    return %c0_i32, %c0_i32_0 : i32, i32
  }
  func.func @transform_3(%arg0: i32) -> (i32, i32) {
    %c0_i32 = arith.constant 0 : i32
    %c0_i32_0 = arith.constant 0 : i32
    %c0_i32_1 = arith.constant 0 : i32
    return %c0_i32, %c0_i32_0 : i32, i32
  }
  func.func @transform_4(%arg0: i32) -> (i32, i32) {
    %c0_i32 = arith.constant 0 : i32
    %c0_i32_0 = arith.constant 0 : i32
    %c0_i32_1 = arith.constant 0 : i32
    return %c0_i32, %c0_i32_0 : i32, i32
  }
  func.func @transform_5(%arg0: i32) -> (i32, i32) {
    %c0_i32 = arith.constant 0 : i32
    %c0_i32_0 = arith.constant 0 : i32
    %c0_i32_1 = arith.constant 0 : i32
    return %c0_i32, %c0_i32_0 : i32, i32
  }
  func.func @transform_6(%arg0: i32) -> (i32, i32, i32) {
    %c0_i32 = arith.constant 0 : i32
    %c0_i32_0 = arith.constant 0 : i32
    %c0_i32_1 = arith.constant 0 : i32
    return %arg0, %c0_i32, %c0_i32_0 : i32, i32, i32
  }
  func.func @transform_7(%arg0: i32) -> (i32, i32) {
    %c0_i32 = arith.constant 0 : i32
    %c0_i32_0 = arith.constant 0 : i32
    %c0_i32_1 = arith.constant 0 : i32
    return %c0_i32, %c0_i32_0 : i32, i32
  }
}

</mosaic_0001>

<bundles_post_ra>
// kernel: _lambda_.1
= control target key start
LH: loop header
LB: loop body
LE: loop exit
PB: predicated region body
PF: predicated region fallthrough
CT: control target
= control target key end

     0   :  { %13 = vsyncpa [#allocation4], 0  ;;  %s1335_s0 = inlined_call_operand.vmem [shape: f32[8,2,128], index: 0, kind: input, shape index: {}]   ;;  %s1336_s1 = inlined_call_operand.vmem [shape: f32[2,128], index: 1, kind: input, shape index: {}]   ;;  %s1337_s2 = inlined_call_operand.hbm [shape: f32[256,128], index: 2, kind: input, shape index: {}]   ;;  %s1338_s3 = inlined_call_operand.vmem [shape: f32[1,128], index: 3, kind: input, shape index: {}]   ;;  %s1339_s4 = inlined_call_operand.hbm [shape: f32[128,128], index: 4, kind: input, shape index: {}]   ;;  %s1340_s5 = inlined_call_operand.vmem [shape: f32[1,128], index: 5, kind: input, shape index: {}]   ;;  %s1341_s6 = inlined_call_operand.hbm [shape: f32[8,2,128], index: 6, kind: output, shape index: {0}]   ;;  %s1342_s7 = inlined_call_operand.hbm [shape: f32[2,128], index: 7, kind: output, shape index: {1}]  }
   0x1   :  { %14 = vsyncpa [#allocation7], 0 }
   0x2   :  { %15 = vsyncpa [#allocation5], 0 }
   0x3   :  { %17 = vsyncpa [#allocation5 + $0x1], 0 }
   0x4   :  { %18 = vsyncpa [#allocation10], 0  ;;  %s1105_s24 = smov 0   ;;  %s1107_s25 = smov 0  }
   0x5   :  { %s1109_s26 = smov 0   ;;  %s1111_s27 = smov 0  }
   0x6 LB: > { %s1126_s28 = sadd.s32 4294967295, %s1054_s27   ;;  %s659_s29 = sadd.s32 4294967294, %s1054_s27   ;;  %s1054_s27 = sphi %s1111_s27, %s1369_s27   ;;  %s1050_s26 = sphi %s1109_s26, %s1368_s26   ;;  %s1046_s25 = sphi %s1107_s25, %s1367_s25   ;;  %s1042_s24 = sphi %s1105_s24, %s1366_s24  }
   0x7   : > { %s1130_s30 = sadd.s32 1, %s1054_s27   ;;  %s162_s8 = sadd.s32 1, %s1050_s26 }
   0x8   : > { %s159_s9 = ssub.s32 %s1054_s27, %s1130_s30  ;;  %p172_p0 = scmp.ne.s32.totalorder %s1050_s26, %s1046_s25 }
   0x9   : > { %p160_p1 = scmp.eq.s32.totalorder %s159_s9, 0  ;;  %p1343_p2 = scmp.eq.s32.totalorder %s1126_s28, 7 }
   0xa   : > { %p178_p3 = scmp.ne.s32.totalorder %s1046_s25, %s1042_s24  ;;  %p179_p4 = scmp.eq.s32.totalorder %s659_s29, 7 }
   0xb   : > { %s1141_s10 = scalar_select %p160_p1, %s1050_s26, %s162_s8  }
   0xc   : > { %p1145_p5 = por %p1343_p2, %p172_p0  ;;  %p1149_p6 = por %p179_p4, %p178_p3 }
   0xd   : > { %1347 = sst [smem:[#allocation15_spill]] %s1141_s10  ;;  %p660_p7 = scmp.ge.s32.totalorder %s1054_s27, 1 }
   0xe   : > { %s1348_s11 = scalar_select %p1145_p5, 1, 0 }
   0xf   : > { %s1349_s12 = scalar_select %p1149_p6, 1, 0 }
  0x10   : > { %p207_p8 = scmp.lt.s32.totalorder %s1054_s27, 9  ;;  %p1344_p10 = scmp.eq.s32.totalorder %s1126_s28, 0 }
  0x11   : > { %s1056_s14 = smov [#allocation3]   ;;  %s1057_s17 = smov [#allocation6]  }
  0x12   : > { %p1157_p11 = pnand %p660_p7, %p207_p8  ;;  %s222_s15 = sshll.u32 %s1056_s14, 4  ;;  %s223_s15 = int_to_ptr.vmem [resolvable:$true] %s222_s15 }
  0x13   : > { %s238_s18 = sshll.u32 %s1057_s17, 4  ;;  %s898_s21 = scalar_lea.hbm %s1337_s2, 4096  ;;  %s1169_s18 = int_to_ptr.vmem [resolvable:$true] %s238_s18 }
  0x14   : > { %s1350_s13 = scalar_select %p1157_p11, 1, 0 }
  0x15   : > { %p836_p12 = pneg %p1157_p11  ;;  %p899_p0 = scmp.ne.s32.totalorder %s1337_s2, %s898_s21 }
  0x16   : > { %p905_p7 = scmp.lt.u32.totalorder %s898_s21, %s1337_s2 }
  0x17   : > { %p1165_p13 = pnand %p1344_p10, %p836_p12 }
  0x19   : > { %p900_p1 = pneg %p1165_p13 }
  0x1b   : > { %p901_p3 = pnand %p900_p1, %p899_p0 }
  0x1d   : > { %p902_p4 = pneg %p901_p3 }
  0x1f   : > { %p907_p8 = pnand %p905_p7, %p902_p4 }
  0x21   : > { %910 = shalt.err (!%p907_p8)
}
  0x22   : > { %s911_s9 = scalar_lea.vmem %s223_s15, 4096  ;;  %p919_p10 = scmp.lt.s32.totalorder %s223_s15, %s223_s15 }
  0x23   : > { %p912_p12 = scmp.ne.s32.totalorder %s223_s15, %s911_s9  ;;  %p920_p6 = scmp.lt.s32.totalorder %s911_s9, %s911_s9 }
  0x25   : > { %p914_p2 = pnand %p912_p12, %p900_p1  ;;  %p921_p5 = por %p920_p6, %p919_p10 }
  0x27   : > { %p915_p9 = pneg %p914_p2 }
  0x29   : > { %p922_p11 = pnand %p921_p5, %p915_p9 }
  0x2b   : > { %925 = shalt.err (!%p922_p11)
}
  0x2c   : > { %s1058_s14 = smov 128   ;;  %s1059_s17 = smov 8  }
  0x2d   : > { %839 = dma.hbm_to_vmem [thread:$0]  (!%p1165_p13), %s1337_s2, 4096, %s223_s15, [#allocation4], %s1058_s14, %s1058_s14, %s1059_s17  }
  0x2e   : > { %s926_s23 = scalar_lea.hbm %s1339_s4, 2048 }
  0x2f   : > { %p927_p2 = scmp.ne.s32.totalorder %s1339_s4, %s926_s23  ;;  %p933_p9 = scmp.lt.u32.totalorder %s926_s23, %s1339_s4 }
  0x31   : > { %p929_p5 = pnand %p927_p2, %p900_p1 }
  0x33   : > { %p930_p6 = pneg %p929_p5 }
  0x35   : > { %p935_p10 = pnand %p933_p9, %p930_p6 }
  0x37   : > { %938 = shalt.err (!%p935_p10)
}
  0x38   : > { %s939_s15 = scalar_lea.vmem %s1169_s18, 2048  ;;  %p947_p4 = scmp.lt.s32.totalorder %s1169_s18, %s1169_s18 }
  0x39   : > { %p940_p11 = scmp.ne.s32.totalorder %s1169_s18, %s939_s15  ;;  %p948_p7 = scmp.lt.s32.totalorder %s939_s15, %s939_s15 }
  0x3b   : > { %p942_p0 = pnand %p940_p11, %p900_p1  ;;  %p949_p8 = por %p948_p7, %p947_p4 }
  0x3d   : > { %p943_p3 = pneg %p942_p0 }
  0x3f   : > { %p950_p12 = pnand %p949_p8, %p943_p3 }
  0x41   : > { %953 = shalt.err (!%p950_p12)
}
  0x42   : > { %842 = dma.hbm_to_vmem [thread:$0]  (!%p1165_p13), %s1339_s4, 2048, %s1169_s18, [#allocation7], %s1058_s14, %s1058_s14, %s1059_s17  }
  0x43   : > { %p1352_p2 = scmp.ne.s32.totalorder %s1350_s13, 0 }
  0x44   : > { %p1353_p5 = scmp.eq.s32.totalorder (!%p1352_p2), %s1126_s28, 0 }
  0x45   : > { %264 = sbr.rel (%p1352_p2) target bundleno = 894 (0x37e), region = 44 }
  0x4c   : > { %1025 = dma.done.wait (%p1353_p5), [#allocation4], 4096   ;;  %p1354_p1 = pmov %p1353_p5 }
  0x4e   : > { %1027 = vsyncadd (%p1354_p1), [#allocation4], 4294963200  ;;  %p1355_p6 = pmov %p1354_p1 }
  0x4f   : > { %p1356_p9 = pmov %p1354_p1 }
  0x50   : > { %1029 = dma.done.wait (%p1355_p6), [#allocation7], 2048  }
  0x51   : > { %1031 = vsyncadd (%p1356_p9), [#allocation7], 4294965248  ;;  %s294_s16 = sand.u32 1, %s1046_s25   ;;  %p299_p13 = scmp.lt.s32.totalorder %s1126_s28, 7 }
  0x52   : > { %s1232_s13 = sshll.u32 %s294_s16, 1  ;;  %p1357_p10 = scmp.ne.s32.totalorder %s1126_s28, 0 }
  0x53   : > { %s300_s18 = scalar_select %p299_p13, %s1126_s28, 7 }
  0x54   : > { %s296_s22 = scalar_lea.vmem [#allocation8], %s1232_s13  ;;  %306 = sbr.rel (%p1357_p10) target bundleno = 91 (0x5b), region = 56  ;;  %v307_v0 = vld [vmem:[%s1336_s1] sm:$0x3] (!%p1357_p10) }
  0x55   : > { %s668_s14 = sshll.u32 %s300_s18, 1  ;;  %308 = vst [vmem:[#allocation2] sm:$0x3] (!%p1357_p10), %v307_v0 }
  0x56   : > { %s1238_s21 = scalar_lea.vmem %s1335_s0, %s668_s14 }
  0x5b PF: > { %v328_v1 = vld [vmem:[#allocation3 + $0x80] sm:$0xff]  ;;  %v329_v2 = vld [vmem:[#allocation3 + $0x88] sm:$0xff]  ;;  %v330_v6 = vld [vmem:[#allocation3 + $0x90] sm:$0xff]  ;;  %v1060_v8 = vmov 0.0|0.0   ;;  %vm1061_vm0 = vmmov 0   ;;  %vm527_vm1 = vcmask 1041408  }
  0x5c   : > { %v312_v3 = vld [vmem:[#allocation3] sm:$0xff]  ;;  %v766_v4 = vpack.c.bf16 %v329_v2, %v328_v1  ;;  %v313_v5 = vld [vmem:[#allocation3 + $0x8] sm:$0xff]  ;;  %v331_v7 = vld [vmem:[#allocation3 + $0x98] sm:$0xff]  ;;  %798 = vmatprep.subr.bf16.mxu1 %v1060_v8  ;;  %s1063_s19 = smov [#allocation9]   ;;  %p1358_p0 = scmp.eq.s32.totalorder %s1126_s28, 7 }
  0x5d   : > { %v768_v9 = vpack.c.bf16 %v313_v5, %v312_v3  ;;  %v770_v10 = vpack.c.bf16 %v331_v7, %v330_v6  ;;  %v314_v11 = vld [vmem:[#allocation3 + $0x10] sm:$0xff]  ;;  %v315_v12 = vld [vmem:[#allocation3 + $0x18] sm:$0xff]  ;;  %v332_v13 = vld [vmem:[#allocation3 + $0xa0] sm:$0xff]  ;;  %s567_s18 = sshll.u32 %s1063_s19, 4  ;;  %s568_s18 = int_to_ptr.vmem [resolvable:$true] %s567_s18 }
  0x5e   : > { %767 = vmatprep.subr.bf16.mxu0 %v766_v4  ;;  %v333_v14 = vld [vmem:[#allocation3 + $0xa8] sm:$0xff]  ;;  %v772_v15 = vpack.c.bf16 %v315_v12, %v314_v11  ;;  %v316_v17 = vld [vmem:[#allocation3 + $0x20] sm:$0xff]  ;;  %v334_v19 = vld [vmem:[#allocation3 + $0xb0] sm:$0xff]  ;;  %s954_s14 = scalar_lea.vmem %s568_s18, 32  ;;  %p961_p7 = scmp.lt.s32.totalorder %s568_s18, %s568_s18 }
  0x5f   : > { %769 = vmatpush3.bf16.msra.mxu0 %v768_v9  ;;  %v774_v16 = vpack.c.bf16 %v333_v14, %v332_v13  ;;  %v317_v18 = vld [vmem:[#allocation3 + $0x28] sm:$0xff]  ;;  %v335_v20 = vld [vmem:[#allocation3 + $0xb8] sm:$0xff]  ;;  %v318_v23 = vld [vmem:[#allocation3 + $0x30] sm:$0xff]  ;;  %v1062_v14 = vmov 0.0   ;;  %p955_p11 = scmp.ne.s32.totalorder %s568_s18, %s954_s14  ;;  %p962_p8 = scmp.lt.s32.totalorder %s954_s14, %s954_s14 }
  0x60   : > { %771 = vmatprep.subr.bf16.mxu0 %v770_v10  ;;  %v776_v21 = vpack.c.bf16 %v317_v18, %v316_v17  ;;  %v778_v22 = vpack.c.bf16 %v335_v20, %v334_v19  ;;  %v319_v24 = vld [vmem:[#allocation3 + $0x38] sm:$0xff]  ;;  %v336_v25 = vld [vmem:[#allocation3 + $0xc0] sm:$0xff]  ;;  %v337_v26 = vld [vmem:[#allocation3 + $0xc8] sm:$0xff]  ;;  %763 = vmatprep.mubr.msk.f32.mxu1 %vm1061_vm0, %v1062_v14 }
  0x61   : > { %v309_v27 = vld [vmem:[%s1238_s21] sm:$0x3]  ;;  %v434_v28 = vld [vmem:[#allocation6] sm:$0xff]  ;;  %v435_v29 = vld [vmem:[#allocation6 + $0x8] sm:$0xff]  ;;  %v780_v31 = vpack.c.bf16 %v319_v24, %v318_v23  ;;  %v782_v34 = vpack.c.bf16 %v337_v26, %v336_v25  ;;  %p956_p3 = pnand %p955_p11, %p1358_p0  ;;  %p963_p12 = por %p962_p8, %p961_p7 }
  0x62   : > { %310 = vst [vmem:[#allocation2 + $0x2] sm:$0x3] %v309_v27  ;;  %v436_v30 = vld [vmem:[#allocation6 + $0x10] sm:$0xff]  ;;  %v799_v32 = vpack.c.bf16 %v435_v29, %v434_v28  ;;  %v437_v33 = vld [vmem:[#allocation6 + $0x18] sm:$0xff]  ;;  %v320_v35 = vld [vmem:[#allocation3 + $0x40] sm:$0xff] }
  0x63   : > { %773 = vmatpush3.bf16.msra.mxu0 %v772_v15  ;;  %v321_v36 = vld [vmem:[#allocation3 + $0x48] sm:$0xff]  ;;  %v338_v37 = vld [vmem:[#allocation3 + $0xd0] sm:$0xff]  ;;  %v339_v38 = vld [vmem:[#allocation3 + $0xd8] sm:$0xff]  ;;  %v802_v39 = vpack.c.bf16 %v437_v33, %v436_v30  ;;  %p957_p4 = pneg %p956_p3 }
  0x64   : > { %775 = vmatprep.subr.bf16.mxu0 %v774_v16  ;;  %800 = vmatpush3.bf16.msra.mxu1 %v799_v32  ;;  %v438_v40 = vld [vmem:[#allocation6 + $0x20] sm:$0xff]  ;;  %v439_v41 = vld [vmem:[#allocation6 + $0x28] sm:$0xff]  ;;  %v784_v42 = vpack.c.bf16 %v321_v36, %v320_v35  ;;  %v786_v43 = vpack.c.bf16 %v339_v38, %v338_v37  ;;  %v322_v44 = vld [vmem:[#allocation3 + $0x50] sm:$0xff] }
  0x65   : > { %801 = vmatprep.subr.bf16.mxu1 %v1060_v8  ;;  %v323_v45 = vld [vmem:[#allocation3 + $0x58] sm:$0xff]  ;;  %v340_v46 = vld [vmem:[#allocation3 + $0xe0] sm:$0xff]  ;;  %v341_v47 = vld [vmem:[#allocation3 + $0xe8] sm:$0xff]  ;;  %v805_v49 = vpack.c.bf16 %v439_v41, %v438_v40  ;;  %p964_p2 = pnand %p963_p12, %p957_p4 }
  0x66   : > { %v440_v51 = vld [vmem:[#allocation6 + $0x30] sm:$0xff]  ;;  %v441_v52 = vld [vmem:[#allocation6 + $0x38] sm:$0xff]  ;;  %v788_v53 = vpack.c.bf16 %v323_v45, %v322_v44  ;;  %v790_v54 = vpack.c.bf16 %v341_v47, %v340_v46  ;;  %v324_v55 = vld [vmem:[#allocation3 + $0x60] sm:$0xff] }
  0x67   : > { %777 = vmatpush3.bf16.msra.mxu0 %v776_v21  ;;  %v325_v56 = vld [vmem:[#allocation3 + $0x68] sm:$0xff]  ;;  %v342_v57 = vld [vmem:[#allocation3 + $0xf0] sm:$0xff]  ;;  %v343_v58 = vld [vmem:[#allocation3 + $0xf8] sm:$0xff]  ;;  %v808_v59 = vpack.c.bf16 %v441_v52, %v440_v51 }
  0x68   : > { %779 = vmatprep.subr.bf16.mxu0 %v778_v22  ;;  %803 = vmatpush3.bf16.msra.mxu1 %v802_v39  ;;  %v442_v60 = vld [vmem:[#allocation6 + $0x40] sm:$0xff]  ;;  %v443_v61 = vld [vmem:[#allocation6 + $0x48] sm:$0xff]  ;;  %v792_v62 = vpack.c.bf16 %v325_v56, %v324_v55  ;;  %v794_v63 = vpack.c.bf16 %v343_v58, %v342_v57  ;;  %v326_v0 = vld [vmem:[#allocation3 + $0x70] sm:$0xff] }
  0x69   : > { %v671_v48 = vld.sshfl [vmem:[#allocation2] sm:$0x33 pattern:$0x76325410]  ;;  %804 = vmatprep.subr.bf16.mxu1 %v1060_v8  ;;  %v811_v2 = vpack.c.bf16 %v443_v61, %v442_v60  ;;  %v444_v3 = vld [vmem:[#allocation6 + $0x50] sm:$0xff]  ;;  %v446_v7 = vld [vmem:[#allocation6 + $0x60] sm:$0xff] }
  0x6a   : > { %v359_v50 = vcombine.high %v671_v48, %v671_v48  ;;  %v327_v1 = vld [vmem:[#allocation3 + $0x78] sm:$0xff]  ;;  %v447_v9 = vld [vmem:[#allocation6 + $0x68] sm:$0xff]  ;;  %v448_v11 = vld [vmem:[#allocation6 + $0x70] sm:$0xff] }
  0x6b   : > { %781 = vmatpush3.bf16.msra.mxu0 %v780_v31  ;;  %v445_v4 = vld [vmem:[#allocation6 + $0x58] sm:$0xff]  ;;  %v796_v5 = vpack.c.bf16 %v327_v1, %v326_v0  ;;  %v817_v10 = vpack.c.bf16 %v447_v9, %v446_v7 }
  0x6c   : > { %783 = vmatprep.subr.bf16.mxu0 %v782_v34  ;;  %426 = vmatprep.mubr.f32.mxu0 %v359_v50  ;;  %v814_v6 = vpack.c.bf16 %v445_v4, %v444_v3  ;;  %v449_v12 = vld [vmem:[#allocation6 + $0x78] sm:$0xff] }
  0x6d   : > { %806 = vmatpush3.bf16.msra.mxu1 %v805_v49  ;;  %v820_v13 = vpack.c.bf16 %v449_v12, %v448_v11  ;;  %v670_v16 = vld [vmem:[%s1338_s3] ss:$0 sm:$0xff] }
  0x6e   : > { %807 = vmatprep.subr.bf16.mxu1 %v1060_v8 }
  0x6f   : > { %785 = vmatpush3.bf16.msra.mxu0 %v784_v42 }
  0x70   : > { %787 = vmatprep.subr.bf16.mxu0 %v786_v43 }
  0x71   : > { %809 = vmatpush3.bf16.msra.mxu1 %v808_v59 }
  0x72   : > { %810 = vmatprep.subr.bf16.mxu1 %v1060_v8 }
  0x73   : > { %789 = vmatpush3.bf16.msra.mxu0 %v788_v53 }
  0x74   : > { %791 = vmatprep.subr.bf16.mxu0 %v790_v54 }
  0x75   : > { %812 = vmatpush3.bf16.msra.mxu1 %v811_v2 }
  0x76   : > { %813 = vmatprep.subr.bf16.mxu1 %v1060_v8 }
  0x77   : > { %793 = vmatpush3.bf16.msra.mxu0 %v792_v62 }
  0x78   : > { %795 = vmatprep.subr.bf16.mxu0 %v794_v63 }
  0x79   : > { %815 = vmatpush3.bf16.msra.mxu1 %v814_v6 }
  0x7a   : > { %816 = vmatprep.subr.bf16.mxu1 %v1060_v8 }
  0x7b   : > { %797 = vmatpush3.bf16.msra.mxu0 %v796_v5 }
  0x7d   : > { %818 = vmatpush3.bf16.msra.mxu1 %v817_v10 }
  0x7e   : > { %427 = vmatmul.mubr.f32.vlgmr.msra.gmra.mrb[0].mxu0 %v671_v48  ;;  %819 = vmatprep.subr.bf16.mxu1 %v1060_v8  ;;  %v672_v8 = vld [vmem:[%s1340_s5] ss:$0 sm:$0xff] }
  0x81   : > { %821 = vmatpush3.bf16.msra.mxu1 %v820_v13 }
 0x151   : > { %v711_v15 = vpop.f32.mrb[0].mxu0 }
 0x152   : > { %v712_v17 = vpop.f32.mrb[1].mxu0 }
 0x153   : > { %v713_v18 = vadd.f32 %v712_v17, %v711_v15 }
 0x155   : > { %v429_v19 = vadd.f32 %v713_v18, %v670_v16 }
 0x157   : > { %432 = vst [vmem:[#allocation2] sm:$0x3] %v429_v19  ;;  %433 = vst [vmem:[#allocation9] sm:$0x3] %v429_v19  ;;  %764 = vmatmul.mubr.f32.vlgmr.msra.gmra.mrb[0].mxu1 %v429_v19 }
 0x22a   : > { %v523_v20 = vpop.f32.mrb[0].mxu1 }
 0x22b   : > { %v524_v21 = vadd.f32 %v672_v8, %v523_v20  ;;  %v765_v22 = vpop.f32.mrb[1].mxu1 }
 0x22d   : > { %v528_v23 = vsel %vm527_vm1, %v524_v21, -inf }
 0x22e   : > { %529 = vmax.xlane.f32.xlu0 %v528_v23 }
 0x2bb   : > { %v530_v24 = vpop.xlane.xlu0 %529 }
 0x2bc   : > { %v531_v25 = vsub.f32 %v524_v21, %v530_v24 }
 0x2be   : > { %v532_v26 = vmul.f32 1.442695, %v531_v25 }
 0x2c0   : > { %894 = vpow2.f32 %v532_v26 }
 0x2ca   : > { %v895_v27 = vpop.eup %894 }
 0x2cb   : > { %v534_v28 = vsel %vm527_vm1, %v895_v27, 0.0 }
 0x2cc   : > { %535 = vadd.xlane.f32.xlu0 %v534_v28 }
 0x2cd   : > { %967 = shalt.err (!%p964_p2)
}
 0x2ce   : > { %s968_s21 = scalar_lea.hbm %s1342_s7, 32  ;;  %p1359_p1 = pmov %p1358_p0 }
 0x2cf   : > { %p969_p5 = scmp.ne.s32.totalorder %s1342_s7, %s968_s21  ;;  %p974_p13 = scmp.lt.u32.totalorder %s968_s21, %s1342_s7 }
 0x2d1   : > { %p970_p6 = pnand %p969_p5, %p1359_p1 }
 0x2d3   : > { %p971_p9 = pneg %p970_p6 }
 0x2d5   : > { %p976_p10 = pnand %p974_p13, %p971_p9 }
 0x2d7   : > { %979 = shalt.err (!%p976_p10)
}
 0x2d8   : > { %p1360_p11 = pmov %p1358_p0  ;;  %s674_s19 = sshll.u32 %s1126_s28, 5 }
 0x2d9   : > { %s556_s14 = sshll.u32 %s296_s22, 4  ;;  %s1285_s21 = scalar_lea.hbm %s1341_s6, %s674_s19  ;;  %s1287_s14 = int_to_ptr.vmem [resolvable:$true] %s556_s14 }
 0x2da   : > { %832 = dma.vmem_to_hbm [thread:$0]  (%p1360_p11), %s568_s18, 32, %s1342_s7, [#allocation10]  }
 0x2db   : > { %s543_s18 = scalar_lea.sflag [#allocation5], %s294_s16  ;;  %s980_s23 = scalar_lea.vmem %s1287_s14, 32 }
 0x2dc   : > { %p981_p0 = scmp.ne.s32.totalorder %s1287_s14, %s980_s23  ;;  %p1361_p3 = scmp.ne.s32.totalorder %s1348_s11, 0 }
 0x2dd   : > { %s1064_s29 = smov [#allocation8]  }
 0x2de   : > { %p982_p4 = pnand %p981_p0, %p1361_p3  ;;  %s984_s8 = sshll.u32 %s1064_s29, 4  ;;  %s985_s8 = int_to_ptr.vmem [resolvable:$false] %s984_s8 }
 0x2df   : > { %s986_s9 = scalar_lea.vmem %s985_s8, 64  ;;  %p987_p8 = scmp.lt.s32.totalorder %s1287_s14, %s985_s8 }
 0x2e0   : > { %p983_p7 = pneg %p982_p4  ;;  %p988_p12 = scmp.lt.s32.totalorder %s986_s9, %s980_s23 }
 0x2e2   : > { %p989_p2 = por %p988_p12, %p987_p8 }
 0x2e4   : > { %p990_p5 = pnand %p989_p2, %p983_p7 }
 0x359   : > { %v536_v29 = vpop.xlane.xlu0 %535 }
 0x35a   : > { %896 = vlog2.f32 %v536_v29 }
 0x364   : > { %v897_v30 = vpop.eup %896 }
 0x365   : > { %v538_v31 = vmul.f32 0.6931472, %v897_v30 }
 0x367   : > { %v539_v32 = vadd.f32 %v538_v31, %v530_v24 }
 0x369   : > { %v540_v33 = vsub.f32 %v524_v21, %v539_v32 }
 0x36b   : > { %541 = vst [vmem:[%s296_s22] sm:$0x3] %v540_v33 }
 0x36c   : > { %993 = shalt.err (!%p990_p5)
}
 0x36d   : > { %s994_s16 = scalar_lea.hbm %s1285_s21, 32  ;;  %s998_s15 = scalar_lea.hbm %s1341_s6, 256 }
 0x36e   : > { %p995_p1 = scmp.ne.s32.totalorder %s1285_s21, %s994_s16  ;;  %p999_p13 = scmp.lt.u32.totalorder %s1285_s21, %s1341_s6 }
 0x36f   : > { %p1000_p10 = scmp.lt.u32.totalorder %s998_s15, %s994_s16  ;;  %p1002_p0 = scmp.lt.u32.totalorder %s994_s16, %s1285_s21 }
 0x370   : > { %p996_p6 = pnand %p995_p1, %p1361_p3 }
 0x371   : > { %p1001_p11 = por %p1000_p10, %p999_p13 }
 0x372   : > { %p997_p9 = pneg %p996_p6 }
 0x373   : > { %p1003_p4 = por %p1002_p0, %p1001_p11 }
 0x375   : > { %p1004_p7 = pnand %p1003_p4, %p997_p9 }
 0x377   : > { %1007 = shalt.err (!%p1004_p7)
}
 0x378   : > { %830 = dma.vmem_to_hbm [thread:$0]  (%p1361_p3), %s1287_s14, 32, %s1285_s21, %s543_s18  }
 0x379   : > { %p1362_p8 = scmp.eq.s32.totalorder %s1126_s28, 7 }
 0x37b   : > { %1033 = dma.done.wait (%p1362_p8), [#allocation10], 32   ;;  %p1363_p12 = pmov %p1362_p8 }
 0x37d   : > { %1035 = vsyncadd (%p1363_p12), [#allocation10], 4294967264 }
 0x37e PF: > { %p853_p2 = scmp.ge.s32.totalorder %s1054_s27, 2  ;;  %s583_s17 = sand.u32 1, %s1042_s24  }
 0x37f   : > { %p1364_p5 = scmp.ne.s32.totalorder %s1349_s12, 0  ;;  %s584_s20 = scalar_lea.sflag [#allocation5], %s583_s17 }
 0x381   : > { %p844_p1 = pnand %p853_p2, %p1364_p5 }
 0x383   : > { %1037 = dma.done.wait (!%p844_p1), %s584_s20, 32  }
 0x384   : > { %1039 = vsyncadd (!%p844_p1), %s584_s20, 4294967264  ;;  %s1365_s11 = sld [smem:[#allocation15_spill]]  ;;  %p21_p3 = scmp.ge.s32.totalorder %s1130_s30, 10  }
 0x385   : > { %s1366_s24 = smov %s1046_s25  ;;  %s1367_s25 = smov %s1050_s26 }
 0x386   : > { %s1369_s27 = smov %s1130_s30  ;;  %23 = sbr.rel (!%p21_p3) target bundleno = 6 (0x6), region = 100 }
 0x38a   : > { %s1368_s26 = smov %s1365_s11 }
 0x38d   :  { %589 = vsyncpa [#allocation4], 1 }
 0x38e   :  { %591 = vsyncpa [#allocation4 + $0x1], 1 }
 0x38f   :  { %592 = vsyncpa [#allocation7], 1 }
 0x390   :  { %593 = vsyncpa [#allocation5], 1 }
 0x391   :  { %595 = vsyncpa [#allocation5 + $0x1], 1 }
 0x392   :  { %596 = vsyncpa [#allocation10], 1 }

</bundles_post_ra>
